<compile_context>
chip_gen: v7x
topology: tpu7x:2x2x1
jax: 0.10.0
libtpu: 0.0.40
codegen_flags: <defaults>
</compile_context>

<pallas_src>
import functools

import jax
import jax.numpy as jnp
from jax import lax
from jax.experimental import pallas as pl
from jax.experimental.pallas import tpu as pltpu


# ----------------------------------------------------------------------------- kernel
def _se_kernel(x_ref, w1t_ref, w2_ref, o_ref, *, inv_hw, use_mxu):
    # x_ref  : (Bt, C, HW)  Bt images; channels on sublanes, spatial on lanes
    # w1t_ref: (C, Cr)      = fc1.weight.T  (prepared once outside the hot path)
    # w2_ref : (C, Cr)      = fc2.weight
    x = x_ref[...]                                                   # (Bt, C, HW) f32

    if use_mxu:
        # Large-C production path (C >= 128): excite FCs on the MXU.
        pooled = jnp.sum(x, axis=2) * inv_hw                         # (Bt, C)
        h = lax.dot_general(pooled, w1t_ref[...], (((1,), (0,)), ((), ())),
                            preferred_element_type=jnp.float32)      # (Bt, Cr)
        h = jnp.maximum(h, 0.0)
        s = lax.dot_general(h, w2_ref[...], (((1,), (1,)), ((), ())),
                            preferred_element_type=jnp.float32)      # (Bt, C)
        s = jnp.clip(s + 3.0, 0.0, 6.0) * (1.0 / 6.0)
        o_ref[...] = x * s[:, :, None]
    else:
        # Tiny-C path (e.g. C=16, Cr=4): VPU broadcasts + XLU reduces, batched over Bt.
        # Squeeze: global average pool over the spatial (lane) axis.
        pooled = jnp.sum(x, axis=2, keepdims=True) * inv_hw          # (Bt, C, 1)
        # Excite FC1 + ReLU: h[b,r] = sum_c fc1_w[r,c] * pooled[b,c]  (sublane reduce)
        h = jnp.sum(w1t_ref[...][None, :, :] * pooled, axis=1, keepdims=True)  # (Bt,1,Cr)
        h = jnp.maximum(h, 0.0)
        # Excite FC2 + Hsigmoid: s[b,c] = relu6(sum_r fc2_w[c,r]*h[b,r] + 3)/6 (lane reduce)
        s = jnp.sum(w2_ref[...][None, :, :] * h, axis=2, keepdims=True)        # (Bt,C,1)
        s = jnp.clip(s + 3.0, 0.0, 6.0) * (1.0 / 6.0)
        # Scale the VMEM-resident feature map; lane-dense store.
        o_ref[...] = x * s


# ----------------------------------------------------------------------------- tiling plan
def _plan_tiling(B, C, HW):
    """Pick (Btile, vmem_limit_bytes) from the per-generation VMEM budget."""
    bytes_per_image = C * HW * 4                       # f32 feature map, per image

    # Physical VMEM per TensorCore: 64 MiB on v7x, 128 MiB on v5e/v6e.  Query when
    # possible; fall back to the conservative v7x figure so we never over-commit.
    phys_vmem = 64 << 20
    try:
        phys_vmem = int(pltpu.get_tpu_info().vmem_capacity_bytes)
    except Exception:
        pass
    # Scoped limit we request: raise well above the 16/32 MiB defaults, but leave
    # headroom below physical for compiler scratch (=> ~48 MiB on v7x, ~100 MiB on v6e).
    vmem_limit = int(min(max(phys_vmem - (16 << 20), 16 << 20), 100 << 20))

    # Per grid step the pipeline holds double-buffered input and output blocks:
    # ~4 x Btile x bytes_per_image (weights are a few hundred bytes).
    budget = int(vmem_limit * 0.75)
    if 4 * bytes_per_image > budget:
        # TODO(synk): two-pass spatially-tiled fallback (pass 1: partial channel sums,
        # pass 2: scale) for feature maps whose double-buffered block exceeds VMEM.
        raise NotImplementedError(
            "per-image feature map too large for the single-pass SE kernel VMEM budget")
    btile_vmem_cap = budget // (4 * bytes_per_image)

    # Keep several grid steps once B is large enough (v7x: 2 TCs, want >=4-8 steps so
    # both cores get work and the DMA pipeline can overlap).  For tiny B, one big block
    # is better: per-step overhead dominates and there is nothing to overlap anyway.
    target_steps = min(B, 8) if B >= 4 else 1
    step_cap = -(-B // target_steps)

    cap = max(1, min(B, btile_vmem_cap, step_cap))
    btile = max(d for d in range(1, cap + 1) if B % d == 0)   # exact tiling of B
    return btile, vmem_limit


# ----------------------------------------------------------------------------- wrapper
def prepare_se_params(fc1_w, fc2_w):
    """One-time weight preparation (outside the per-call hot path).

    fc1_w: (C//r, C) = torch fc1.weight  ->  stored transposed as (C, C//r).
    fc2_w: (C, C//r) = torch fc2.weight  ->  unchanged.
    """
    return jnp.transpose(fc1_w), fc2_w


@functools.partial(jax.jit, donate_argnums=(0,))
def se_module(x_nchw, fc1_w_t, fc2_w):
    """SEModule forward.  x_nchw: (B, C, H, W) f32; fc1_w_t: (C, C//r); fc2_w: (C, C//r).

    x_nchw is donated: the output aliases its HBM buffer (input_output_aliases below).
    """
    B, C, H, W = x_nchw.shape
    Cr = fc1_w_t.shape[1]
    HW = H * W

    btile, vmem_limit = _plan_tiling(B, C, HW)
    x2 = x_nchw.reshape(B, C, HW)       # free reshape (no transpose): spatial -> lanes

    out = pl.pallas_call(
        functools.partial(_se_kernel, inv_hw=1.0 / float(HW), use_mxu=(C >= 128)),
        out_shape=jax.ShapeDtypeStruct((B, C, HW), x2.dtype),
        grid_spec=pltpu.PrefetchScalarGridSpec(
            num_scalar_prefetch=0,
            grid=(B // btile,),
            in_specs=[
                pl.BlockSpec((btile, C, HW), lambda b: (b, 0, 0)),   # Btile images/step
                pl.BlockSpec((C, Cr), lambda b: (0, 0)),             # fc1.T, resident
                pl.BlockSpec((C, Cr), lambda b: (0, 0)),             # fc2,   resident
            ],
            out_specs=pl.BlockSpec((btile, C, HW), lambda b: (b, 0, 0)),
        ),
        compiler_params=pltpu.CompilerParams(
            dimension_semantics=("parallel",),      # batch steps independent (v7x TCs)
            vmem_limit_bytes=vmem_limit,            # explicit, per-generation budget
        ),
        input_output_aliases={0: 0},                # output reuses x's HBM buffer
    )(x2, fc1_w_t, fc2_w)

    return out.reshape(B, C, H, W)


# ----------------------------------------------------------------------------- reference (pure JAX)
def reference(x, fc1_w, fc2_w):
    y = jnp.mean(x, axis=(2, 3))                                   # (B, C)
    y = jnp.maximum(y @ fc1_w.T, 0.0)                              # (B, Cr)
    y = jnp.clip(y @ fc2_w.T + 3.0, 0.0, 6.0) / 6.0                # hsigmoid -> (B, C)
    return x * y[:, :, None, None]


# ----------------------------------------------------------------------------- main
if __name__ == "__main__":
    key = jax.random.PRNGKey(0)
    kx, k1, k2 = jax.random.split(key, 3)

    B, C, H, W = 2, 16, 16, 16
    reduction = 4
    Cr = C // reduction

    x = jax.random.normal(kx, (B, C, H, W), jnp.float32)           # NCHW, like torch
    fc1_w = 0.3 * jax.random.normal(k1, (Cr, C), jnp.float32)      # Linear(C, C//4).weight
    fc2_w = 0.3 * jax.random.normal(k2, (C, Cr), jnp.float32)      # Linear(C//4, C).weight

    # Reference first (x is donated to the kernel call below).
    ref = jax.block_until_ready(reference(x, fc1_w, fc2_w))

    # One-time parameter preparation (hoists the tiny fc1 transpose out of the hot path).
    fc1_w_t, fc2_w_p = prepare_se_params(fc1_w, fc2_w)

    out = jax.block_until_ready(se_module(x, fc1_w_t, fc2_w_p))

    assert out.shape == (B, C, H, W), out.shape
    assert jnp.allclose(out, ref, rtol=1e-5, atol=1e-5), float(jnp.max(jnp.abs(out - ref)))
    print("KERNEL_OK")
</pallas_src>

<mosaic_0001>
module attributes {stable_mosaic.version = 11 : i64} {
  func.func @_se_kernel(%arg0: i32, %arg1: memref<2x16x256xf32, #tpu.memory_space<vmem>>, %arg2: memref<16x4xf32, #tpu.memory_space<vmem>>, %arg3: memref<16x4xf32, #tpu.memory_space<vmem>>, %arg4: memref<2x16x256xf32, #tpu.memory_space<vmem>>) attributes {dimension_semantics = [#tpu.dimension_semantics<parallel>], iteration_bounds = array<i64: 1>, scalar_prefetch = 0 : i64, scratch_operands = 0 : i64, tpu.core_type = #tpu.core_type<tc>, window_params = [{transform_indices = @transform_0, window_bounds = array<i64: 2, 16, 256>}, {pipeline_mode = #tpu.pipeline_mode<synchronous>, transform_indices = @transform_1, window_bounds = array<i64: 16, 4>}, {pipeline_mode = #tpu.pipeline_mode<synchronous>, transform_indices = @transform_2, window_bounds = array<i64: 16, 4>}, {transform_indices = @transform_3, window_bounds = array<i64: 2, 16, 256>}]} {
    %c0 = arith.constant 0 : index
    %c0_0 = arith.constant 0 : index
    %c0_1 = arith.constant 0 : index
    %0 = vector.load %arg1[%c0, %c0_0, %c0_1] : memref<2x16x256xf32, #tpu.memory_space<vmem>>, vector<2x16x256xf32>
    %cst = arith.constant dense<0.000000e+00> : vector<2x16xf32>
    %1 = vector.multi_reduction <add>, %0, %cst [2] : vector<2x16x256xf32> to vector<2x16xf32>
    %2 = vector.shape_cast %1 : vector<2x16xf32> to vector<2x16x1xf32>
    %cst_2 = arith.constant 3.906250e-03 : f32
    %3 = vector.broadcast %cst_2 : f32 to vector<2x16x1xf32>
    %4 = arith.mulf %2, %3 : vector<2x16x1xf32>
    %c0_3 = arith.constant 0 : index
    %c0_4 = arith.constant 0 : index
    %5 = vector.load %arg2[%c0_3, %c0_4] : memref<16x4xf32, #tpu.memory_space<vmem>>, vector<16x4xf32>
    %6 = vector.shape_cast %5 : vector<16x4xf32> to vector<1x16x4xf32>
    %7 = vector.broadcast %6 : vector<1x16x4xf32> to vector<2x16x4xf32>
    %8 = vector.broadcast %4 : vector<2x16x1xf32> to vector<2x16x4xf32>
    %9 = arith.mulf %7, %8 : vector<2x16x4xf32>
    %cst_5 = arith.constant dense<0.000000e+00> : vector<2x4xf32>
    %10 = vector.multi_reduction <add>, %9, %cst_5 [1] : vector<2x16x4xf32> to vector<2x4xf32>
    %11 = vector.shape_cast %10 : vector<2x4xf32> to vector<2x1x4xf32>
    %cst_6 = arith.constant 0.000000e+00 : f32
    %12 = vector.broadcast %cst_6 : f32 to vector<2x1x4xf32>
    %13 = arith.maximumf %11, %12 : vector<2x1x4xf32>
    %c0_7 = arith.constant 0 : index
    %c0_8 = arith.constant 0 : index
    %14 = vector.load %arg3[%c0_7, %c0_8] : memref<16x4xf32, #tpu.memory_space<vmem>>, vector<16x4xf32>
    %15 = vector.shape_cast %14 : vector<16x4xf32> to vector<1x16x4xf32>
    %16 = vector.broadcast %15 : vector<1x16x4xf32> to vector<2x16x4xf32>
    %17 = vector.broadcast %13 : vector<2x1x4xf32> to vector<2x16x4xf32>
    %18 = arith.mulf %16, %17 : vector<2x16x4xf32>
    %cst_9 = arith.constant dense<0.000000e+00> : vector<2x16xf32>
    %19 = vector.multi_reduction <add>, %18, %cst_9 [2] : vector<2x16x4xf32> to vector<2x16xf32>
    %20 = vector.shape_cast %19 : vector<2x16xf32> to vector<2x16x1xf32>
    %cst_10 = arith.constant 3.000000e+00 : f32
    %21 = vector.broadcast %cst_10 : f32 to vector<2x16x1xf32>
    %22 = arith.addf %20, %21 : vector<2x16x1xf32>
    %cst_11 = arith.constant 0.000000e+00 : f32
    %cst_12 = arith.constant 6.000000e+00 : f32
    %23 = vector.broadcast %cst_11 : f32 to vector<2x16x1xf32>
    %24 = arith.maximumf %23, %22 : vector<2x16x1xf32>
    %25 = vector.broadcast %cst_12 : f32 to vector<2x16x1xf32>
    %26 = arith.minimumf %25, %24 : vector<2x16x1xf32>
    %cst_13 = arith.constant 0.166666672 : f32
    %27 = vector.broadcast %cst_13 : f32 to vector<2x16x1xf32>
    %28 = arith.mulf %26, %27 : vector<2x16x1xf32>
    %29 = vector.broadcast %28 : vector<2x16x1xf32> to vector<2x16x256xf32>
    %30 = arith.mulf %0, %29 : vector<2x16x256xf32>
    %c0_14 = arith.constant 0 : index
    %c0_15 = arith.constant 0 : index
    %c0_16 = arith.constant 0 : index
    %31 = vector.load %arg4[%c0_14, %c0_15, %c0_16] : memref<2x16x256xf32, #tpu.memory_space<vmem>>, vector<2x16x256xf32>
    tpu.vector_store %arg4[%c0_14, %c0_15, %c0_16], %30 {strides = array<i32>} : memref<2x16x256xf32, #tpu.memory_space<vmem>>, vector<2x16x256xf32>,
    return
  }
  func.func @transform_0(%arg0: i32) -> (i32, i32, i32) {
    %c0_i32 = arith.constant 0 : i32
    %c0_i32_0 = arith.constant 0 : i32
    %c0_i32_1 = arith.constant 0 : i32
    return %arg0, %c0_i32, %c0_i32_0 : i32, i32, i32
  }
  func.func @transform_1(%arg0: i32) -> (i32, i32) {
    %c0_i32 = arith.constant 0 : i32
    %c0_i32_0 = arith.constant 0 : i32
    %c0_i32_1 = arith.constant 0 : i32
    return %c0_i32, %c0_i32_0 : i32, i32
  }
  func.func @transform_2(%arg0: i32) -> (i32, i32) {
    %c0_i32 = arith.constant 0 : i32
    %c0_i32_0 = arith.constant 0 : i32
    %c0_i32_1 = arith.constant 0 : i32
    return %c0_i32, %c0_i32_0 : i32, i32
  }
  func.func @transform_3(%arg0: i32) -> (i32, i32, i32) {
    %c0_i32 = arith.constant 0 : i32
    %c0_i32_0 = arith.constant 0 : i32
    %c0_i32_1 = arith.constant 0 : i32
    return %arg0, %c0_i32, %c0_i32_0 : i32, i32, i32
  }
}

</mosaic_0001>

<bundles_post_ra>
// kernel: se_module.1
= control target key start
LH: loop header
LB: loop body
LE: loop exit
PB: predicated region body
PF: predicated region fallthrough
CT: control target
= control target key end

     0   :  { %vm44_vm0 = vcmask 31744   ;;  %s239_s0 = inlined_call_operand.vmem [shape: f32[2,16,256], index: 0, kind: input, shape index: {}, may-alias: {0,3}]   ;;  %s240_s1 = inlined_call_operand.vmem [shape: f32[16,4], index: 1, kind: input, shape index: {}]   ;;  %s241_s2 = inlined_call_operand.vmem [shape: f32[16,4], index: 2, kind: input, shape index: {}]   ;;  %s242_s3 = inlined_call_operand.vmem [shape: f32[2,16,256], index: 3, kind: output, shape index: {}, may-alias: {0,3}]  }
   0x1   :  { %v142_v0 = vld [vmem:[%s239_s0 + $0x20] sm:$0xff]  ;;  %v147_v1 = vld [vmem:[%s239_s0 + $0x28] sm:$0xff]  ;;  %v164_v5 = vld [vmem:[%s239_s0 + $0x30] sm:$0xff] }
   0x2   :  { %v152_v2 = vld [vmem:[%s239_s0] sm:$0xff]  ;;  %v28_v3 = vadd.f32 %v147_v1, %v142_v0  ;;  %v159_v4 = vld [vmem:[%s239_s0 + $0x8] sm:$0xff]  ;;  %v169_v6 = vld [vmem:[%s239_s0 + $0x38] sm:$0xff] }
   0x3   :  { %v22_v7 = vadd.f32 %v159_v4, %v152_v2  ;;  %v176_v8 = vld [vmem:[%s239_s0 + $0x10] sm:$0xff]  ;;  %v181_v9 = vld [vmem:[%s239_s0 + $0x18] sm:$0xff]  ;;  %v31_v10 = vadd.f32 %v169_v6, %v164_v5  ;;  %v38_v15 = vld [vmem:[%s240_s1] sm:$0xff] }
   0x4   :  { %29 = vadd.xlane.f32.xlu1 %v28_v3  ;;  %v25_v11 = vadd.f32 %v181_v9, %v176_v8  ;;  %v39_v18 = vld [vmem:[%s240_s1 + $0x8] sm:$0xff]  ;;  %v65_v45 = vld [vmem:[%s241_s2] sm:$0xff] }
   0x5   :  { %23 = vadd.xlane.f32.xlu0 %v22_v7  ;;  %v66_v44 = vld [vmem:[%s241_s2 + $0x8] sm:$0xff] }
   0x8   :  { %32 = vadd.xlane.f32.xlu1 %v31_v10 }
   0x9   :  { %26 = vadd.xlane.f32.xlu0 %v25_v11 }
  0x91   :  { %v30_v12 = vpop.xlane.xlu1 %29 }
  0x92   :  { %v36_v13 = vmul.f32 0.00390625, %v30_v12  ;;  %v24_v14 = vpop.xlane.xlu0 %23 }
  0x93   :  { %v34_v16 = vmul.f32 0.00390625, %v24_v14 }
  0x94   :  { %v42_v17 = vmul.f32 %v38_v15, %v36_v13 }
  0x95   :  { %v33_v19 = vpop.xlane.xlu1 %32  ;;  %v40_v22 = vmul.f32 %v38_v15, %v34_v16 }
  0x96   :  { %v37_v20 = vmul.f32 0.00390625, %v33_v19  ;;  %v27_v21 = vpop.xlane.xlu0 %26  ;;  %v54_v24 = vsel %vm44_vm0, %v42_v17, 0.0 }
  0x97   :  { %v35_v23 = vmul.f32 0.00390625, %v27_v21  ;;  %v45_v28 = vsel %vm44_vm0, %v40_v22, 0.0 }
  0x98   :  { %v43_v25 = vmul.f32 %v39_v18, %v37_v20 }
  0x99   :  { %v41_v26 = vmul.f32 %v39_v18, %v35_v23 }
  0x9a   :  { %v55_v27 = vsel %vm44_vm0, %v43_v25, 0.0 }
  0x9b   :  { %v56_v29 = vadd.f32 %v55_v27, %v54_v24  ;;  %v46_v30 = vsel %vm44_vm0, %v41_v26, 0.0 }
  0x9c   :  { %v47_v31 = vadd.f32 %v46_v30, %v45_v28 }
  0x9d   :  { %v57_v32 = vrot.slane %v56_v29, 4 }
  0x9e   :  { %v48_v33 = vrot.slane %v47_v31, 4 }
  0x9f   :  { %v58_v34 = vadd.f32 %v57_v32, %v56_v29 }
  0xa0   :  { %v49_v35 = vadd.f32 %v48_v33, %v47_v31 }
  0xa1   :  { %v59_v36 = vrot.slane %v58_v34, 2 }
  0xa2   :  { %v50_v37 = vrot.slane %v49_v35, 2 }
  0xa3   :  { %v60_v38 = vadd.f32 %v59_v36, %v58_v34 }
  0xa4   :  { %v51_v39 = vadd.f32 %v50_v37, %v49_v35 }
  0xa5   :  { %v61_v40 = vrot.slane %v60_v38, 1 }
  0xa6   :  { %v52_v41 = vrot.slane %v51_v39, 1 }
  0xa7   :  { %v62_v42 = vadd.f32 %v61_v40, %v60_v38 }
  0xa8   :  { %v53_v43 = vadd.f32 %v52_v41, %v51_v39 }
  0xa9   :  { %v64_v47 = vmax.f32 %v62_v42, 0.0 }
  0xaa   :  { %v63_v46 = vmax.f32 %v53_v43, 0.0 }
  0xab   :  { %v70_v52 = vmul.f32 %v66_v44, %v64_v47  ;;  %v69_v53 = vmul.f32 %v65_v45, %v64_v47 }
  0xac   :  { %v68_v48 = vmul.f32 %v66_v44, %v63_v46  ;;  %v67_v49 = vmul.f32 %v65_v45, %v63_v46 }
  0xad   :  { %v80_v54 = vsel %vm44_vm0, %v70_v52, 0.0  ;;  %v77_v55 = vsel %vm44_vm0, %v69_v53, 0.0 }
  0xae   :  { %v74_v50 = vsel %vm44_vm0, %v68_v48, 0.0  ;;  %v71_v51 = vsel %vm44_vm0, %v67_v49, 0.0 }
  0xaf   :  { %75 = vadd.xlane.f32.xlu1 %v74_v50  ;;  %72 = vadd.xlane.f32.xlu0 %v71_v51 }
  0xb3   :  { %81 = vadd.xlane.f32.xlu1 %v80_v54  ;;  %78 = vadd.xlane.f32.xlu0 %v77_v55 }
 0x13c   :  { %v76_v56 = vpop.xlane.xlu1 %75  ;;  %v73_v57 = vpop.xlane.xlu0 %72 }
 0x13d   :  { %v84_v58 = vadd.f32 3.0, %v76_v56  ;;  %v83_v59 = vadd.f32 3.0, %v73_v57 }
 0x13f   :  { %v88_v60 = vmax.f32 %v84_v58, 0.0  ;;  %v87_v61 = vmax.f32 %v83_v59, 0.0 }
 0x140   :  { %v82_v62 = vpop.xlane.xlu1 %81  ;;  %v79_v63 = vpop.xlane.xlu0 %78 }
 0x141   :  { %v92_v3 = vmin.f32 %v88_v60, 6.0  ;;  %v91_v7 = vmin.f32 %v87_v61, 6.0  ;;  %v86_v10 = vadd.f32 3.0, %v82_v62  ;;  %v85_v11 = vadd.f32 3.0, %v79_v63 }
 0x143   :  { %v96_v12 = vmul.f32 0.16666667, %v92_v3  ;;  %v95_v13 = vmul.f32 0.16666667, %v91_v7  ;;  %v90_v14 = vmax.f32 %v86_v10, 0.0  ;;  %v89_v15 = vmax.f32 %v85_v11, 0.0 }
 0x145   :  { %v101_v16 = vmul.f32 %v96_v12, %v176_v8  ;;  %v102_v17 = vmul.f32 %v96_v12, %v181_v9  ;;  %v99_v18 = vmul.f32 %v95_v13, %v152_v2  ;;  %v100_v19 = vmul.f32 %v95_v13, %v159_v4 }
 0x146   :  { %v94_v20 = vmin.f32 %v90_v14, 6.0  ;;  %v93_v21 = vmin.f32 %v89_v15, 6.0 }
 0x147   :  { %109 = vst [vmem:[%s242_s3 + $0x10] sm:$0xff] %v101_v16  ;;  %110 = vst [vmem:[%s242_s3 + $0x18] sm:$0xff] %v102_v17 }
 0x148   :  { %107 = vst [vmem:[%s242_s3] sm:$0xff] %v99_v18  ;;  %108 = vst [vmem:[%s242_s3 + $0x8] sm:$0xff] %v100_v19  ;;  %v98_v2 = vmul.f32 0.16666667, %v94_v20  ;;  %v97_v4 = vmul.f32 0.16666667, %v93_v21 }
 0x14a   :  { %v105_v8 = vmul.f32 %v98_v2, %v164_v5  ;;  %v106_v9 = vmul.f32 %v98_v2, %v169_v6  ;;  %v103_v22 = vmul.f32 %v97_v4, %v142_v0  ;;  %v104_v23 = vmul.f32 %v97_v4, %v147_v1 }
 0x14c   :  { %113 = vst [vmem:[%s242_s3 + $0x30] sm:$0xff] %v105_v8  ;;  %114 = vst [vmem:[%s242_s3 + $0x38] sm:$0xff] %v106_v9 }
 0x14d   :  { %111 = vst [vmem:[%s242_s3 + $0x20] sm:$0xff] %v103_v22  ;;  %112 = vst [vmem:[%s242_s3 + $0x28] sm:$0xff] %v104_v23 }

</bundles_post_ra>
